<compile_context>
chip_gen: v6e
topology: v6e:2x2x1
jax: 0.10.0
libtpu: 0.0.40
codegen_flags: <defaults>
</compile_context>

<pallas_src>
import functools

import jax
import jax.numpy as jnp
from jax import lax
from jax.experimental import pallas as pl
from jax.experimental.pallas import tpu as pltpu

LANE = 128
SUBLANE = 8
# Max vreg-groups per grid step: 512 * (8,128) = 4096 rows -> 2 MiB f32 tile
# per input (>= the 1024/2048/4096-row targets for v5e/v6e/v7x).
MAX_GROUPS = 512


def _huber_kernel(yhat_ref, y_ref, out_ref, *, delta, n_elems, g, need_mask):
    # Cast in-kernel (inputs arrive in native dtype).
    yh = yhat_ref[...].astype(jnp.float32)
    yt = y_ref[...].astype(jnp.float32)
    diff = yh - yt
    adiff = jnp.abs(diff)
    # Branch-free Huber: c = min(|d|, delta); contrib = c*(|d| - 0.5*c)
    #   |d| <= delta -> 0.5*d^2 ; else -> delta*(|d| - 0.5*delta)
    c = jnp.minimum(adiff, jnp.float32(delta))
    contrib = c * (adiff - 0.5 * c)

    if need_mask:
        # Only emitted when the final grid block is partial (reads unspecified
        # rows beyond the array): zero out everything past the real elements.
        i = pl.program_id(0)
        shape = (g, SUBLANE, LANE)
        grp = lax.broadcasted_iota(jnp.int32, shape, 0)
        row = lax.broadcasted_iota(jnp.int32, shape, 1)
        col = lax.broadcasted_iota(jnp.int32, shape, 2)
        idx = (i * g + grp) * (SUBLANE * LANE) + row * LANE + col
        contrib = jnp.where(idx < n_elems, contrib, jnp.float32(0.0))

    # Fold the g vreg-groups into one (8, 128) partial sum: pure VPU adds,
    # no cross-lane/cross-sublane (XLU) work on the serial path.
    out_ref[0] = jnp.sum(contrib, axis=0)


def huber_loss(y_hat: jax.Array, y: jax.Array, delta: float = 1.0) -> jax.Array:
    """Equivalent of torch.nn.functional.huber_loss(y_hat, y, delta=delta) (mean)."""
    assert y_hat.shape == y.shape, "huber_loss expects matching shapes"
    assert delta >= 0.0, "delta must be non-negative"
    n_elems = int(y_hat.size)

    flat_hat = y_hat.reshape(-1)
    flat_y = y.reshape(-1)

    tile_elems = SUBLANE * LANE  # 1024
    padded = pl.cdiv(n_elems, tile_elems) * tile_elems
    pad = padded - n_elems
    if pad:
        # Zero pad (<= 1023 elems) only when needed; diff == 0 contributes 0
        # for delta >= 0.  Skipped entirely for sizes already multiple of 1024.
        flat_hat = jnp.pad(flat_hat, (0, pad))
        flat_y = jnp.pad(flat_y, (0, pad))

    r8 = padded // tile_elems  # number of (8, 128) vreg-groups
    hat3d = flat_hat.reshape(r8, SUBLANE, LANE)
    y3d = flat_y.reshape(r8, SUBLANE, LANE)

    g = min(MAX_GROUPS, r8)            # groups per grid step (multiple of 1 vreg)
    num_blocks = pl.cdiv(r8, g)
    need_mask = (r8 % g) != 0          # partial final block -> mask in-kernel

    kernel = functools.partial(
        _huber_kernel, delta=float(delta), n_elems=n_elems, g=g, need_mask=need_mask
    )

    partials = pl.pallas_call(
        kernel,
        out_shape=jax.ShapeDtypeStruct((num_blocks, SUBLANE, LANE), jnp.float32),
        grid_spec=pltpu.PrefetchScalarGridSpec(
            num_scalar_prefetch=0,
            grid=(num_blocks,),
            in_specs=[
                pl.BlockSpec((g, SUBLANE, LANE), lambda i: (i, 0, 0)),
                pl.BlockSpec((g, SUBLANE, LANE), lambda i: (i, 0, 0)),
            ],
            # Lane-dense per-block partial sums; no cross-step carry so the
            # grid axis can be parallel (both TCs on v7x).
            out_specs=pl.BlockSpec((1, SUBLANE, LANE), lambda i: (i, 0, 0)),
        ),
        compiler_params=pltpu.CompilerParams(
            dimension_semantics=("parallel",),
            vmem_limit_bytes=32 * 1024 * 1024,
        ),
    )(hat3d, y3d)

    # Tiny final reduction (num_blocks * 1024 f32) + mean in plain JAX.
    return jnp.sum(partials) / jnp.float32(n_elems)


def _reference_huber(y_hat, y, delta=1.0):
    diff = y_hat - y
    adiff = jnp.abs(diff)
    return jnp.mean(
        jnp.where(adiff <= delta, 0.5 * diff * diff, delta * (adiff - 0.5 * delta))
    )


if __name__ == "__main__":
    key = jax.random.PRNGKey(0)
    k1, k2 = jax.random.split(key)
    # Example shapes consistent with an NCHW prediction/target pair.
    y_hat = jax.random.normal(k1, (2, 4, 16, 16), dtype=jnp.float32) * 2.0
    y = jax.random.normal(k2, (2, 4, 16, 16), dtype=jnp.float32)

    loss = jax.block_until_ready(huber_loss(y_hat, y, delta=1.0))
    ref = _reference_huber(y_hat, y, delta=1.0)
    assert jnp.allclose(loss, ref, rtol=1e-5, atol=1e-6), (loss, ref)

    # Ragged size (not a multiple of 1024) exercising the zero-pad path.
    k3, k4 = jax.random.split(k1)
    a = jax.random.normal(k3, (3, 5, 7), dtype=jnp.float32)
    b = jax.random.normal(k4, (3, 5, 7), dtype=jnp.float32)
    loss2 = jax.block_until_ready(huber_loss(a, b, delta=0.5))
    ref2 = _reference_huber(a, b, delta=0.5)
    assert jnp.allclose(loss2, ref2, rtol=1e-5, atol=1e-6), (loss2, ref2)

    print("KERNEL_OK")
</pallas_src>

<mosaic_0001>
module attributes {stable_mosaic.version = 11 : i64} {
  func.func @_huber_kernel(%arg0: i32, %arg1: memref<2x8x128xf32, #tpu.memory_space<vmem>>, %arg2: memref<2x8x128xf32, #tpu.memory_space<vmem>>, %arg3: memref<1x8x128xf32, #tpu.memory_space<vmem>>) attributes {dimension_semantics = [#tpu.dimension_semantics<parallel>], iteration_bounds = array<i64: 1>, scalar_prefetch = 0 : i64, scratch_operands = 0 : i64, tpu.core_type = #tpu.core_type<tc>, window_params = [{transform_indices = @transform_0, window_bounds = array<i64: 2, 8, 128>}, {transform_indices = @transform_1, window_bounds = array<i64: 2, 8, 128>}, {transform_indices = @transform_2, window_bounds = array<i64: 1, 8, 128>}]} {
    %c0 = arith.constant 0 : index
    %c0_0 = arith.constant 0 : index
    %c0_1 = arith.constant 0 : index
    %0 = vector.load %arg1[%c0, %c0_0, %c0_1] : memref<2x8x128xf32, #tpu.memory_space<vmem>>, vector<2x8x128xf32>
    %c0_2 = arith.constant 0 : index
    %c0_3 = arith.constant 0 : index
    %c0_4 = arith.constant 0 : index
    %1 = vector.load %arg2[%c0_2, %c0_3, %c0_4] : memref<2x8x128xf32, #tpu.memory_space<vmem>>, vector<2x8x128xf32>
    %2 = arith.subf %0, %1 : vector<2x8x128xf32>
    %3 = math.absf %2 : vector<2x8x128xf32>
    %cst = arith.constant 1.000000e+00 : f32
    %4 = vector.broadcast %cst : f32 to vector<2x8x128xf32>
    %5 = arith.minimumf %3, %4 : vector<2x8x128xf32>
    %cst_5 = arith.constant 5.000000e-01 : f32
    %6 = vector.broadcast %cst_5 : f32 to vector<2x8x128xf32>
    %7 = arith.mulf %6, %5 : vector<2x8x128xf32>
    %8 = arith.subf %3, %7 : vector<2x8x128xf32>
    %9 = arith.mulf %5, %8 : vector<2x8x128xf32>
    %cst_6 = arith.constant dense<0.000000e+00> : vector<8x128xf32>
    %10 = vector.multi_reduction <add>, %9, %cst_6 [0] : vector<2x8x128xf32> to vector<8x128xf32>
    %c0_7 = arith.constant 0 : index
    %c0_8 = arith.constant 0 : index
    %c0_9 = arith.constant 0 : index
    %11 = vector.load %arg3[%c0_7, %c0_8, %c0_9] : memref<1x8x128xf32, #tpu.memory_space<vmem>>, vector<1x8x128xf32>
    %12 = vector.shape_cast %11 : vector<1x8x128xf32> to vector<8x128xf32>
    %13 = vector.shape_cast %10 : vector<8x128xf32> to vector<1x8x128xf32>
    tpu.vector_store %arg3[%c0_7, %c0_8, %c0_9], %13 {strides = array<i32>} : memref<1x8x128xf32, #tpu.memory_space<vmem>>, vector<1x8x128xf32>,
    return
  }
  func.func @transform_0(%arg0: i32) -> (i32, i32, i32) {
    %c0_i32 = arith.constant 0 : i32
    %c0_i32_0 = arith.constant 0 : i32
    %c0_i32_1 = arith.constant 0 : i32
    return %arg0, %c0_i32, %c0_i32_0 : i32, i32, i32
  }
  func.func @transform_1(%arg0: i32) -> (i32, i32, i32) {
    %c0_i32 = arith.constant 0 : i32
    %c0_i32_0 = arith.constant 0 : i32
    %c0_i32_1 = arith.constant 0 : i32
    return %arg0, %c0_i32, %c0_i32_0 : i32, i32, i32
  }
  func.func @transform_2(%arg0: i32) -> (i32, i32, i32) {
    %c0_i32 = arith.constant 0 : i32
    %c0_i32_0 = arith.constant 0 : i32
    %c0_i32_1 = arith.constant 0 : i32
    return %arg0, %c0_i32, %c0_i32_0 : i32, i32, i32
  }
}

</mosaic_0001>

<bundles_post_ra>
// kernel: tpu_custom_call.1
= control target key start
LH: loop header
LB: loop body
LE: loop exit
PB: predicated region body
PF: predicated region fallthrough
CT: control target
= control target key end

     0   :  { %7 = vsyncpa [#allocation3], 0  ;;  %s174_s0 = inlined_call_operand.hbm [shape: f32[2,8,128], index: 0, kind: input, shape index: {}]   ;;  %s175_s1 = inlined_call_operand.hbm [shape: f32[2,8,128], index: 1, kind: input, shape index: {}]   ;;  %s176_s2 = inlined_call_operand.hbm [shape: f32[1,8,128], index: 2, kind: output, shape index: {}]  }
   0x1   :  { %8 = vsyncpa [#allocation6], 0 }
   0x2   :  { %9 = vsyncpa [#allocation4], 0  ;;  %s145_s9 = smov [#allocation2]  }
   0x3   :  { %s15_s10 = sshll.u32 %s145_s9, 4  ;;  %s16_s10 = int_to_ptr.vmem [resolvable:$true] %s15_s10 }
   0x4   :  { %s87_s11 = scalar_lea.vmem %s16_s10, 256  ;;  %p92_p1 = scmp.lt.s32.totalorder %s16_s10, %s16_s10 }
   0x5   :  { %p88_p0 = scmp.ne.s32.totalorder %s16_s10, %s87_s11  ;;  %p93_p2 = scmp.lt.s32.totalorder %s87_s11, %s87_s11 }
   0x7   :  { %p94_p3 = por %p93_p2, %p92_p1 }
   0x9   :  { %p95_p4 = pnand %p94_p3, %p88_p0 }
   0xb   :  { %98 = shalt.err (!%p95_p4)
}
   0xc   :  { %s146_s12 = smov 128   ;;  %s147_s13 = smov 8  }
   0xd   :  { %21 = dma.hbm_to_vmem [thread:$0]  %s174_s0, 256, %s16_s10, [#allocation3], %s146_s12, %s146_s12, %s147_s13  }
   0xe   :  { %s148_s16 = smov [#allocation5]  }
   0xf   :  { %s27_s17 = sshll.u32 %s148_s16, 4  ;;  %s28_s17 = int_to_ptr.vmem [resolvable:$true] %s27_s17 }
  0x10   :  { %s107_s18 = scalar_lea.vmem %s28_s17, 256  ;;  %p112_p6 = scmp.lt.s32.totalorder %s28_s17, %s28_s17 }
  0x11   :  { %p108_p5 = scmp.ne.s32.totalorder %s28_s17, %s107_s18  ;;  %p113_p7 = scmp.lt.s32.totalorder %s107_s18, %s107_s18 }
  0x13   :  { %p114_p8 = por %p113_p7, %p112_p6 }
  0x15   :  { %p115_p9 = pnand %p114_p8, %p108_p5 }
  0x17   :  { %118 = shalt.err (!%p115_p9)
}
  0x18   :  { %33 = dma.hbm_to_vmem [thread:$0]  %s175_s1, 256, %s28_s17, [#allocation6], %s146_s12, %s146_s12, %s147_s13  }
  0x19   :  { %139 = dma.done.wait [#allocation3], 256  }
  0x1a   :  { %140 = vsyncadd [#allocation3], 4294967040 }
  0x1b   :  { %141 = dma.done.wait [#allocation6], 256  }
  0x1c   :  { %142 = vsyncadd [#allocation6], 4294967040  ;;  %v40_v0 = vld [vmem:[#allocation2] sm:$0xff]  ;;  %v41_v1 = vld [vmem:[#allocation2 + $0x8] sm:$0xff]  ;;  %s149_s0 = smov [#allocation7]  }
  0x1d   :  { %v42_v2 = vld [vmem:[#allocation5] sm:$0xff]  ;;  %v43_v3 = vld [vmem:[#allocation5 + $0x8] sm:$0xff]  ;;  %s64_s1 = sshll.u32 %s149_s0, 4  ;;  %s65_s1 = int_to_ptr.vmem [resolvable:$true] %s64_s1 }
  0x1e   :  { %v44_v4 = vsub.f32 %v40_v0, %v42_v2  ;;  %v45_v5 = vsub.f32 %v41_v1, %v43_v3  ;;  %s119_s21 = scalar_lea.vmem %s65_s1, 128  ;;  %p124_p11 = scmp.lt.s32.totalorder %s65_s1, %s65_s1 }
  0x1f   :  { %p120_p10 = scmp.ne.s32.totalorder %s65_s1, %s119_s21  ;;  %p125_p12 = scmp.lt.s32.totalorder %s119_s21, %s119_s21 }
  0x20   :  { %v46_v6 = vand.u32 2147483647, %v44_v4  ;;  %v47_v7 = vand.u32 2147483647, %v45_v5 }
  0x21   :  { %p126_p13 = por %p125_p12, %p124_p11 }
  0x22   :  { %v48_v8 = vmin.f32 %v46_v6, 1.0  ;;  %v49_v9 = vmin.f32 %v47_v7, 1.0 }
  0x23   :  { %p127_p0 = pnand %p126_p13, %p120_p10 }
  0x24   :  { %v50_v10 = vmul.f32 0.5, %v48_v8  ;;  %v51_v11 = vmul.f32 0.5, %v49_v9 }
  0x26   :  { %v52_v12 = vsub.f32 %v46_v6, %v50_v10  ;;  %v53_v13 = vsub.f32 %v47_v7, %v51_v11 }
  0x28   :  { %v54_v14 = vmul.f32 %v52_v12, %v48_v8  ;;  %v55_v15 = vmul.f32 %v53_v13, %v49_v9 }
  0x2a   :  { %v56_v16 = vadd.f32 %v55_v15, %v54_v14 }
  0x2c   :  { %57 = vst [vmem:[#allocation7] sm:$0xff] %v56_v16 }
  0x2d   :  { %130 = shalt.err (!%p127_p0)
}
  0x2e   :  { %67 = dma.vmem_to_hbm [thread:$0]  %s65_s1, 128, %s176_s2, [#allocation4]  }
  0x2f   :  { %143 = dma.done.wait [#allocation4], 128  }
  0x30   :  { %144 = vsyncadd [#allocation4], 4294967168 }
  0x31   :  { %71 = vsyncpa [#allocation3], 1 }
  0x32   :  { %72 = vsyncpa [#allocation6], 1 }
  0x33   :  { %73 = vsyncpa [#allocation4], 1 }

</bundles_post_ra>
